<compile_context>
chip_gen: v5e
topology: v5e:2x2
jax: 0.10.0
libtpu: 0.0.40
codegen_flags: <defaults>
</compile_context>

<pallas_src>
import jax
import jax.numpy as jnp
from jax.experimental import pallas as pl
from jax.experimental.pallas import tpu as pltpu


def _round_up(x, m):
    return ((x + m - 1) // m) * m


def _full_gmm_kernel(x_ref, w_ref, out_ref):
    # x_ref:   (B, F, TS)      native layout, S in lanes
    # w_ref:   (1, Kb, K_pad)  fused quadratic-form weights (istd/mean folded in)
    # out_ref: (B, Kb, TS)     slab of the (B, C, S) output (already normalized)
    B, F, TS = x_ref.shape
    K_pad = w_ref.shape[2]
    w = w_ref[0]                                        # (Kb, K_pad)

    # Constant tail rows of the design matrix: [1, 0, ..., 0].  Hoisted out of
    # the b-loop (JAX does not CSE broadcast_in_dim).
    n_tail = K_pad - F * F - F                          # >= 1
    tail = (jax.lax.broadcasted_iota(jnp.int32, (n_tail, TS), 0) == 0
            ).astype(jnp.float32)

    # B is small & static -> unrolled; w / tail are reused across b.
    # TODO(synk): switch to lax.fori_loop(..., unroll=True) if B grows past ~4.
    for b in range(B):
        xb = x_ref[b]                                   # (F, TS)
        # Design matrix rows: [x_f * x_g for all (f, g)] ++ [x_f] ++ [1, 0...]
        rows = [xb * xb[f:f + 1, :] for f in range(F)]  # F blocks of (F, TS)
        rows.append(xb)                                 # linear terms
        rows.append(tail)                               # constant + zero pad
        x2 = jnp.concatenate(rows, axis=0)              # (K_pad, TS)
        # One MXU matmul does the whole F-reduction AND the (.-mean)*istd affine.
        out_ref[b] = jnp.dot(w, x2, preferred_element_type=jnp.float32)


def full_gmm_layer(x_nft, mu, precisions_chol, llk_mean, llk_inv_std,
                   *, ts_max=1024, max_w_bytes=2 << 20):
    """Pallas implementation of FullGMMLayer.forward.

    x_nft: (n_batch, n_features, n_samples) — same layout as the PyTorch module.
    Returns (n_batch, n_components, n_samples), float32.
    """
    B, F, S = x_nft.shape
    C = mu.shape[0]
    f32 = jnp.float32

    # ---- tile sizes ------------------------------------------------------
    K = F * F + F + 1                       # quadratic + linear + constant rows
    K_pad = _round_up(K, 8)

    S_r = _round_up(S, 128)
    TS = min(ts_max, S_r)                   # lane tile, multiple of 128
    if S_r > 128 and pl.cdiv(S, TS) < 2:    # keep >= 2 s-steps for v7x megacore
        TS = _round_up(pl.cdiv(S_r, 2), 128)
    n_s = pl.cdiv(S, TS)                    # ragged tail handled by Pallas OOB

    C_pad = _round_up(C, 8)                 # minimal component padding (8-align)
    Kb = 8
    for cand in range(8, C_pad + 1, 8):     # largest group dividing C_pad that fits
        if C_pad % cand == 0 and cand * K_pad * 4 <= max_w_bytes:
            Kb = cand
    G = C_pad // Kb

    # ---- glue: fused quadratic-form weights (no transpose / S-pad of x) ---
    x = x_nft.astype(f32)
    pc = precisions_chol.astype(f32)                        # (C, F, F)  P_k
    mu_f = mu.astype(f32)                                   # (C, F)
    hi = jax.lax.Precision.HIGHEST
    lam = jnp.einsum("kfi,kgi->kfg", pc, pc, precision=hi)  # Lam_k = P_k P_k^T
    bvec = jnp.einsum("kfg,kg->kf", lam, mu_f, precision=hi)    # Lam_k mu_k
    cval = jnp.einsum("kf,kf->k", bvec, mu_f, precision=hi)     # mu^T Lam mu
    mean = llk_mean.reshape(C).astype(f32)
    istd = llk_inv_std.reshape(C).astype(f32)

    w = jnp.concatenate(
        [lam.reshape(C, F * F), -2.0 * bvec, (cval - mean)[:, None]], axis=1)
    w = w * istd[:, None]                                   # (C, K) fused weights
    w = jnp.pad(w, ((0, C_pad - C), (0, K_pad - K)))        # zero rows / cols
    w_all = w.reshape(G, Kb, K_pad)

    out = pl.pallas_call(
        _full_gmm_kernel,
        out_shape=jax.ShapeDtypeStruct((B, C_pad, S), f32),
        grid=(n_s, G),                                      # group axis innermost
        in_specs=[
            # x tile depends only on s -> DMAed once, reused for all groups
            pl.BlockSpec((B, F, TS), lambda s, c: (0, 0, s)),
            pl.BlockSpec((1, Kb, K_pad), lambda s, c: (c, 0, 0)),
        ],
        out_specs=pl.BlockSpec((B, Kb, TS), lambda s, c: (0, c, s)),
        compiler_params=pltpu.CompilerParams(
            dimension_semantics=("parallel", "parallel"),
            vmem_limit_bytes=48 * 1024 * 1024),
    )(x, w_all)

    # layout is already (B, C, S); slice is a no-op when C % 8 == 0
    return out if C_pad == C else out[:, :C, :]


def _ref_forward(x_nft, mu, pc, llk_mean, llk_inv_std):
    """Pure-JAX reference mirroring the PyTorch forward exactly."""
    x = jnp.transpose(x_nft, (0, 2, 1))                       # (B, S, F)
    diff = x[:, :, None, :] - mu[None, None, :, :]            # (B, S, C, F)
    y = jnp.einsum("bscf,cfg->bscg", diff, pc,
                   precision=jax.lax.Precision.HIGHEST)
    log_prob = jnp.sum(jnp.square(y), axis=-1)                # (B, S, C)
    out = jnp.transpose(log_prob, (0, 2, 1))                  # (B, C, S)
    return (out - llk_mean[None]) * llk_inv_std[None]


if __name__ == "__main__":
    # Small deterministic setup consistent with the module.  Shapes chosen so
    # the s-grid (2 steps), the 8-aligned component path (C % 8 == 0 -> no pad)
    # and the fused-weight path are all exercised:
    #   n_batch=2, n_features=8, n_samples=768, n_components=40
    B, F, S, C = 2, 8, 768, 40
    key = jax.random.PRNGKey(0)
    k_x, k_mu, k_sig, k_lm, k_ls = jax.random.split(key, 5)

    x = jax.random.normal(k_x, (B, F, S), dtype=jnp.float32)
    mu = jax.random.normal(k_mu, (C, F), dtype=jnp.float32)

    # Build SPD full covariances, then precisions_chol = inv(chol(sigma)).T
    # (same math as FullGMMLayer._compute_precision_cholesky, done in glue).
    A = jax.random.normal(k_sig, (C, F, F), dtype=jnp.float32)
    sigma = jnp.einsum("cij,ckj->cik", A, A) + F * jnp.eye(F, dtype=jnp.float32)
    L = jnp.linalg.cholesky(sigma)                            # lower, (C, F, F)
    eye = jnp.eye(F, dtype=jnp.float32)
    inv_L = jax.vmap(
        lambda Lk: jax.scipy.linalg.solve_triangular(Lk, eye, lower=True))(L)
    precisions_chol = jnp.transpose(inv_L, (0, 2, 1))         # (C, F, F)

    llk_mean = jax.random.normal(k_lm, (C, 1), dtype=jnp.float32)
    llk_std = jax.random.uniform(k_ls, (C, 1), dtype=jnp.float32,
                                 minval=0.5, maxval=1.5)
    llk_inv_std = 1.0 / llk_std

    out = full_gmm_layer(x, mu, precisions_chol, llk_mean, llk_inv_std)
    out = jax.block_until_ready(out)

    ref = _ref_forward(x, mu, precisions_chol, llk_mean, llk_inv_std)
    assert out.shape == (B, C, S) and out.dtype == jnp.float32
    assert jnp.allclose(out, ref, rtol=1e-3, atol=1e-3), "mismatch vs reference"

    print("KERNEL_OK")
</pallas_src>

<mosaic_0001>
module attributes {stable_mosaic.version = 11 : i64} {
  func.func @_full_gmm_kernel(%arg0: i32, %arg1: i32, %arg2: memref<2x8x384xf32, #tpu.memory_space<vmem>>, %arg3: memref<1x40x80xf32, #tpu.memory_space<vmem>>, %arg4: memref<2x40x384xf32, #tpu.memory_space<vmem>>) attributes {dimension_semantics = [#tpu.dimension_semantics<parallel>, #tpu.dimension_semantics<parallel>], iteration_bounds = array<i64: 2, 1>, scalar_prefetch = 0 : i64, scratch_operands = 0 : i64, tpu.core_type = #tpu.core_type<tc>, window_params = [{transform_indices = @transform_0, window_bounds = array<i64: 2, 8, 384>}, {transform_indices = @transform_1, window_bounds = array<i64: 1, 40, 80>}, {transform_indices = @transform_2, window_bounds = array<i64: 2, 40, 384>}]} {
    %c0 = arith.constant 0 : index
    %c0_0 = arith.constant 0 : index
    %c0_1 = arith.constant 0 : index
    %0 = vector.load %arg3[%c0, %c0_0, %c0_1] : memref<1x40x80xf32, #tpu.memory_space<vmem>>, vector<1x40x80xf32>
    %1 = vector.shape_cast %0 : vector<1x40x80xf32> to vector<40x80xf32>
    %2 = tpu.iota {dimensions = array<i32: 0>} : vector<8x384xi32>
    %c0_i32 = arith.constant 0 : i32
    %3 = vector.broadcast %c0_i32 : i32 to vector<8x384xi32>
    %4 = arith.cmpi eq, %2, %3 : vector<8x384xi32>
    %5 = arith.extui %4 : vector<8x384xi1> to vector<8x384xi32>
    %6 = arith.sitofp %5 : vector<8x384xi32> to vector<8x384xf32>
    %c0_2 = arith.constant 0 : index
    %c0_3 = arith.constant 0 : index
    %c0_4 = arith.constant 0 : index
    %7 = vector.load %arg2[%c0_2, %c0_3, %c0_4] : memref<2x8x384xf32, #tpu.memory_space<vmem>>, vector<1x8x384xf32>
    %8 = vector.shape_cast %7 : vector<1x8x384xf32> to vector<8x384xf32>
    %9 = vector.extract_strided_slice %8 {offsets = [0, 0], sizes = [1, 384], strides = [1, 1]} : vector<8x384xf32> to vector<1x384xf32>
    %10 = vector.broadcast %9 : vector<1x384xf32> to vector<8x384xf32>
    %11 = arith.mulf %8, %10 : vector<8x384xf32>
    %12 = vector.extract_strided_slice %8 {offsets = [1, 0], sizes = [1, 384], strides = [1, 1]} : vector<8x384xf32> to vector<1x384xf32>
    %13 = vector.broadcast %12 : vector<1x384xf32> to vector<8x384xf32>
    %14 = arith.mulf %8, %13 : vector<8x384xf32>
    %15 = vector.extract_strided_slice %8 {offsets = [2, 0], sizes = [1, 384], strides = [1, 1]} : vector<8x384xf32> to vector<1x384xf32>
    %16 = vector.broadcast %15 : vector<1x384xf32> to vector<8x384xf32>
    %17 = arith.mulf %8, %16 : vector<8x384xf32>
    %18 = vector.extract_strided_slice %8 {offsets = [3, 0], sizes = [1, 384], strides = [1, 1]} : vector<8x384xf32> to vector<1x384xf32>
    %19 = vector.broadcast %18 : vector<1x384xf32> to vector<8x384xf32>
    %20 = arith.mulf %8, %19 : vector<8x384xf32>
    %21 = vector.extract_strided_slice %8 {offsets = [4, 0], sizes = [1, 384], strides = [1, 1]} : vector<8x384xf32> to vector<1x384xf32>
    %22 = vector.broadcast %21 : vector<1x384xf32> to vector<8x384xf32>
    %23 = arith.mulf %8, %22 : vector<8x384xf32>
    %24 = vector.extract_strided_slice %8 {offsets = [5, 0], sizes = [1, 384], strides = [1, 1]} : vector<8x384xf32> to vector<1x384xf32>
    %25 = vector.broadcast %24 : vector<1x384xf32> to vector<8x384xf32>
    %26 = arith.mulf %8, %25 : vector<8x384xf32>
    %27 = vector.extract_strided_slice %8 {offsets = [6, 0], sizes = [1, 384], strides = [1, 1]} : vector<8x384xf32> to vector<1x384xf32>
    %28 = vector.broadcast %27 : vector<1x384xf32> to vector<8x384xf32>
    %29 = arith.mulf %8, %28 : vector<8x384xf32>
    %30 = vector.extract_strided_slice %8 {offsets = [7, 0], sizes = [1, 384], strides = [1, 1]} : vector<8x384xf32> to vector<1x384xf32>
    %31 = vector.broadcast %30 : vector<1x384xf32> to vector<8x384xf32>
    %32 = arith.mulf %8, %31 : vector<8x384xf32>
    %33 = tpu.concatenate %11, %14, %17, %20, %23, %26, %29, %32, %8, %6 in 0 : vector<8x384xf32>, vector<8x384xf32>, vector<8x384xf32>, vector<8x384xf32>, vector<8x384xf32>, vector<8x384xf32>, vector<8x384xf32>, vector<8x384xf32>, vector<8x384xf32>, vector<8x384xf32> -> vector<80x384xf32>
    %cst = arith.constant dense<0.000000e+00> : vector<40x384xf32>
    %34 = tpu.matmul %1, %33, %cst {dimension_numbers = #tpu.dot_dimension_numbers<[1], [0], [0], [1], [0, 0, 1, 1], [], []>} : vector<40x80xf32>, vector<80x384xf32>, vector<40x384xf32> -> vector<40x384xf32>
    %c0_5 = arith.constant 0 : index
    %c0_6 = arith.constant 0 : index
    %c0_7 = arith.constant 0 : index
    %35 = vector.load %arg4[%c0_5, %c0_6, %c0_7] : memref<2x40x384xf32, #tpu.memory_space<vmem>>, vector<1x40x384xf32>
    %36 = vector.shape_cast %35 : vector<1x40x384xf32> to vector<40x384xf32>
    %37 = vector.shape_cast %34 : vector<40x384xf32> to vector<1x40x384xf32>
    tpu.vector_store %arg4[%c0_5, %c0_6, %c0_7], %37 {strides = array<i32>} : memref<2x40x384xf32, #tpu.memory_space<vmem>>, vector<1x40x384xf32>,
    %c1 = arith.constant 1 : index
    %c0_8 = arith.constant 0 : index
    %c0_9 = arith.constant 0 : index
    %38 = vector.load %arg2[%c1, %c0_8, %c0_9] : memref<2x8x384xf32, #tpu.memory_space<vmem>>, vector<1x8x384xf32>
    %39 = vector.shape_cast %38 : vector<1x8x384xf32> to vector<8x384xf32>
    %40 = vector.extract_strided_slice %39 {offsets = [0, 0], sizes = [1, 384], strides = [1, 1]} : vector<8x384xf32> to vector<1x384xf32>
    %41 = vector.broadcast %40 : vector<1x384xf32> to vector<8x384xf32>
    %42 = arith.mulf %39, %41 : vector<8x384xf32>
    %43 = vector.extract_strided_slice %39 {offsets = [1, 0], sizes = [1, 384], strides = [1, 1]} : vector<8x384xf32> to vector<1x384xf32>
    %44 = vector.broadcast %43 : vector<1x384xf32> to vector<8x384xf32>
    %45 = arith.mulf %39, %44 : vector<8x384xf32>
    %46 = vector.extract_strided_slice %39 {offsets = [2, 0], sizes = [1, 384], strides = [1, 1]} : vector<8x384xf32> to vector<1x384xf32>
    %47 = vector.broadcast %46 : vector<1x384xf32> to vector<8x384xf32>
    %48 = arith.mulf %39, %47 : vector<8x384xf32>
    %49 = vector.extract_strided_slice %39 {offsets = [3, 0], sizes = [1, 384], strides = [1, 1]} : vector<8x384xf32> to vector<1x384xf32>
    %50 = vector.broadcast %49 : vector<1x384xf32> to vector<8x384xf32>
    %51 = arith.mulf %39, %50 : vector<8x384xf32>
    %52 = vector.extract_strided_slice %39 {offsets = [4, 0], sizes = [1, 384], strides = [1, 1]} : vector<8x384xf32> to vector<1x384xf32>
    %53 = vector.broadcast %52 : vector<1x384xf32> to vector<8x384xf32>
    %54 = arith.mulf %39, %53 : vector<8x384xf32>
    %55 = vector.extract_strided_slice %39 {offsets = [5, 0], sizes = [1, 384], strides = [1, 1]} : vector<8x384xf32> to vector<1x384xf32>
    %56 = vector.broadcast %55 : vector<1x384xf32> to vector<8x384xf32>
    %57 = arith.mulf %39, %56 : vector<8x384xf32>
    %58 = vector.extract_strided_slice %39 {offsets = [6, 0], sizes = [1, 384], strides = [1, 1]} : vector<8x384xf32> to vector<1x384xf32>
    %59 = vector.broadcast %58 : vector<1x384xf32> to vector<8x384xf32>
    %60 = arith.mulf %39, %59 : vector<8x384xf32>
    %61 = vector.extract_strided_slice %39 {offsets = [7, 0], sizes = [1, 384], strides = [1, 1]} : vector<8x384xf32> to vector<1x384xf32>
    %62 = vector.broadcast %61 : vector<1x384xf32> to vector<8x384xf32>
    %63 = arith.mulf %39, %62 : vector<8x384xf32>
    %64 = tpu.concatenate %42, %45, %48, %51, %54, %57, %60, %63, %39, %6 in 0 : vector<8x384xf32>, vector<8x384xf32>, vector<8x384xf32>, vector<8x384xf32>, vector<8x384xf32>, vector<8x384xf32>, vector<8x384xf32>, vector<8x384xf32>, vector<8x384xf32>, vector<8x384xf32> -> vector<80x384xf32>
    %cst_10 = arith.constant dense<0.000000e+00> : vector<40x384xf32>
    %65 = tpu.matmul %1, %64, %cst_10 {dimension_numbers = #tpu.dot_dimension_numbers<[1], [0], [0], [1], [0, 0, 1, 1], [], []>} : vector<40x80xf32>, vector<80x384xf32>, vector<40x384xf32> -> vector<40x384xf32>
    %c1_11 = arith.constant 1 : index
    %c0_12 = arith.constant 0 : index
    %c0_13 = arith.constant 0 : index
    %66 = vector.load %arg4[%c1_11, %c0_12, %c0_13] : memref<2x40x384xf32, #tpu.memory_space<vmem>>, vector<1x40x384xf32>
    %67 = vector.shape_cast %66 : vector<1x40x384xf32> to vector<40x384xf32>
    %68 = vector.shape_cast %65 : vector<40x384xf32> to vector<1x40x384xf32>
    tpu.vector_store %arg4[%c1_11, %c0_12, %c0_13], %68 {strides = array<i32>} : memref<2x40x384xf32, #tpu.memory_space<vmem>>, vector<1x40x384xf32>,
    return
  }
  func.func @transform_0(%arg0: i32, %arg1: i32) -> (i32, i32, i32) {
    %c0_i32 = arith.constant 0 : i32
    %c0_i32_0 = arith.constant 0 : i32
    %c0_i32_1 = arith.constant 0 : i32
    return %c0_i32, %c0_i32_0, %arg0 : i32, i32, i32
  }
  func.func @transform_1(%arg0: i32, %arg1: i32) -> (i32, i32, i32) {
    %c0_i32 = arith.constant 0 : i32
    %c0_i32_0 = arith.constant 0 : i32
    %c0_i32_1 = arith.constant 0 : i32
    return %arg1, %c0_i32, %c0_i32_0 : i32, i32, i32
  }
  func.func @transform_2(%arg0: i32, %arg1: i32) -> (i32, i32, i32) {
    %c0_i32 = arith.constant 0 : i32
    %c0_i32_0 = arith.constant 0 : i32
    return %c0_i32, %arg1, %arg0 : i32, i32, i32
  }
}

</mosaic_0001>

<bundles_post_ra>
// kernel: tpu_custom_call.1
= control target key start
LH: loop header
LB: loop body
LE: loop exit
PB: predicated region body
PF: predicated region fallthrough
CT: control target
= control target key end

     0   :  { %7 = vsyncpa [#allocation3], 0  ;;  %s1369_s0 = inlined_call_operand.hbm [shape: f32[2,8,768], index: 0, kind: input, shape index: {}]   ;;  %s1370_s1 = inlined_call_operand.hbm [shape: f32[1,40,80], index: 1, kind: input, shape index: {}]   ;;  %s1371_s2 = inlined_call_operand.hbm [shape: f32[2,40,768], index: 2, kind: output, shape index: {}]  }
   0x1   :  { %9 = vsyncpa [#allocation3 + $0x1], 0 }
   0x2   :  { %10 = vsyncpa [#allocation6], 0 }
   0x3   :  { %11 = vsyncpa [#allocation4], 0 }
   0x4   :  { %13 = vsyncpa [#allocation4 + $0x1], 0  ;;  %s1019_s9 = smov 0   ;;  %s1021_s10 = smov 0  }
   0x5   :  { %s1023_s11 = smov 0   ;;  %s1025_s12 = smov 0  }
   0x6   :  { %s1027_s13 = smov 0   ;;  %s1029_s14 = smov 0  }
   0x7 LB: > { %s673_s15 = sadd.s32 4294967295, %s992_s14   ;;  %s674_s16 = sadd.s32 4294967294, %s992_s14   ;;  %s992_s14 = sphi %s1029_s14, %s19_s14   ;;  %s988_s13 = sphi %s1027_s13, %s1382_s13   ;;  %s984_s12 = sphi %s1025_s12, %s1381_s12   ;;  %s980_s11 = sphi %s1023_s11, %s1380_s11   ;;  %s976_s10 = sphi %s1021_s10, %s1379_s10   ;;  %s972_s9 = sphi %s1019_s9, %s1378_s9  }
   0x8   : > { %p51_p0 = scmp.ne.s32.totalorder %s976_s10, %s972_s9  ;;  %p1053_p1 = scmp.eq.s32.totalorder %s673_s15, 0 }
   0x9   : > { %p1057_p2 = scmp.eq.s32.totalorder %s673_s15, 1  ;;  %p109_p3 = scmp.eq.s32.totalorder %s674_s16, 1 }
   0xa   : > { %p1063_p4 = por %p1053_p1, %p51_p0  ;;  %p675_p5 = scmp.ge.s32.totalorder %s992_s14, 1 }
   0xb   : > { %p1068_p6 = por %p109_p3, %p51_p0  ;;  %p116_p7 = scmp.lt.s32.totalorder %s992_s14, 3 }
   0xc   : > { %s130_s23 = sshll.u32 %s1370_s1, 4  ;;  %s994_s25 = smov [#allocation5]   ;;  %s131_s23 = int_to_ptr.hbm [resolvable:$true] %s130_s23 }
   0xd   : > { %p1076_p8 = pnand %p675_p5, %p116_p7  ;;  %s132_s26 = sshll.u32 %s994_s25, 4  ;;  %s133_s26 = int_to_ptr.vmem [resolvable:$true] %s132_s26 }
   0xe   : > { %p677_p11 = scmp.ge.s32.totalorder %s992_s14, 2  ;;  %s995_s27 = smov 128  }
   0xf   : > { %p772_p9 = pneg %p1076_p8  ;;  %s996_s28 = smov 8  }
  0x10   : > { %s31_s29 = sadd.s32 1, %s988_s13  ;;  %s38_s30 = sadd.s32 1, %s980_s11 }
  0x11   : > { %p773_p10 = pnand %p772_p9, %p1053_p1  ;;  %p33_p12 = scmp.ge.s32.totalorder %s31_s29, 2 }
  0x12   : > { %p45_p13 = scmp.ne.s32.totalorder %s980_s11, %s976_s10  ;;  %p46_p0 = scmp.eq.s32.totalorder %s992_s14, 0 }
  0x13   : > { %775 = dma.hbm_to_vmem [thread:$0]  (!%p773_p10), %s131_s23, 640, %s133_s26, [#allocation6], %s995_s27, %s995_s27, %s996_s28  }
  0x14   : > { %s1384_s29 = smov (%p33_p12, %s31_s29), 0  ;;  %p47_p3 = por %p46_p0, %p45_p13 }
  0x15   : > { %p1094_p5 = por %p1057_p2, %p45_p13  ;;  %s35_s4 = ssub.s32 %s988_s13, %s1384_s29 }
  0x16   : > { %p785_p7 = scmp.lt.s32.totalorder %s992_s14, 2  ;;  %p36_p9 = scmp.eq.s32.totalorder %s35_s4, 0 }
  0x17   : > { %s146_s5 = sand.u32 1, %s980_s11   ;;  %s739_s8 = smul.u32 24, %s988_s13 }
  0x18   : > { %s761_s6 = smul.u32 48, %s146_s5  ;;  %p777_p10 = pnand %p785_p7, %p47_p3 }
  0x19   : > { %s1103_s7 = scalar_select %p36_p9, %s980_s11, %s38_s30  }
  0x1a   : > { %s150_s15 = scalar_lea.vmem [#allocation2], %s761_s6  ;;  %s155_s23 = scalar_lea.hbm %s1369_s0, %s739_s8 }
  0x1b   : > { %s158_s16 = sshll.u32 %s150_s15, 4  ;;  %s156_s18 = sshll.u32 %s155_s23, 4  ;;  %s159_s16 = int_to_ptr.vmem [resolvable:$true] %s158_s16  ;;  %s157_s18 = int_to_ptr.hbm [resolvable:$true] %s156_s18 }
  0x1c   : > { %s147_s25 = scalar_lea.sflag [#allocation3], %s146_s5  ;;  %s997_s26 = smov 768  }
  0x1d   : > { %s998_s27 = smov 384   ;;  %s999_s28 = smov 24  }
  0x1e   : > { %779 = dma.hbm_to_vmem [thread:$0]  (!%p777_p10), %s157_s18, 768, %s159_s16, %s147_s25, %s997_s26, %s998_s27, %s999_s28  }
  0x1f   : > { %170 = sbr.rel (%p1076_p8) target bundleno = 258 (0x102), region = 28  ;;  %s1112_s30 = sand.u32 (!%p1076_p8), 1, %s976_s10  }
  0x20   : > { %s762_s4 = smul.u32 (!%p1076_p8), 48, %s1112_s30  ;;  %s173_s6 = scalar_lea.sflag (!%p1076_p8), [#allocation3], %s1112_s30 }
  0x22   : > { %s1116_s8 = scalar_lea.vmem (!%p1076_p8), [#allocation2], %s762_s4 }
  0x24   : > { %959 = dma.done.wait (%p1063_p4), %s173_s6, 768  }
  0x25   : > { %961 = vsyncadd (%p1063_p4), %s173_s6, 4294966528 }
  0x26   : > { %963 = dma.done.wait (%p1053_p1), [#allocation6], 640  }
  0x27   : > { %965 = vsyncadd (%p1053_p1), [#allocation6], 4294966656  ;;  %v211_v0 = vlaneseq  ;;  %v1000_v2 = vmov 1.0   ;;  %v216_v3 = vld [vmem:[%s1116_s8] sm:$0xff]  ;;  %v217_v4 = vld [vmem:[%s1116_s8 + $0x8] sm:$0xff]  ;;  %vm267_vm1 = vcmask 654336  }
  0x28   : > { %v261_v5 = vperm.slane %v216_v3, 7  ;;  %v262_v6 = vperm.slane %v217_v4, 7  ;;  %v255_v7 = vperm.slane %v216_v3, 6  ;;  %v256_v8 = vperm.slane %v217_v4, 6  ;;  %v1144_v37 = vld [vmem:[%s1116_s8 + $0x10] sm:$0xff]  ;;  %v1147_v38 = vld [vmem:[%s1116_s8 + $0x18] sm:$0xff] }
  0x29   : > { %v1126_v1 = vshrl.u32 %v211_v0, 7  ;;  %v249_v9 = vperm.slane %v216_v3, 5  ;;  %v250_v10 = vperm.slane %v217_v4, 5  ;;  %v243_v11 = vperm.slane %v216_v3, 4  ;;  %v1152_v41 = vld [vmem:[%s1116_s8 + $0x20] sm:$0xff]  ;;  %v1155_v42 = vld [vmem:[%s1116_s8 + $0x28] sm:$0xff] }
  0x2a   : > { %v244_v12 = vperm.slane %v217_v4, 4  ;;  %v264_v13 = vmul.f32 %v261_v5, %v216_v3  ;;  %v265_v14 = vmul.f32 %v262_v6, %v217_v4  ;;  %v258_v15 = vmul.f32 %v255_v7, %v216_v3  ;;  %v1157_v43 = vld [vmem:[#allocation5] sm:$0xff]  ;;  %v1173_v48 = vld [vmem:[#allocation5 + $0x18] sm:$0xff]  ;;  %s763_s17 = smul.u32 240, %s1112_s30  ;;  %s926_s27 = scalar_lea.hbm %s1371_s2, 480 }
  0x2b   : > { %vm213_vm0 = vcmp.eq.s32.totalorder %v1126_v1, 0  ;;  %v259_v16 = vmul.f32 %v256_v8, %v217_v4  ;;  %v252_v17 = vmul.f32 %v249_v9, %v216_v3  ;;  %v253_v18 = vmul.f32 %v250_v10, %v217_v4  ;;  %v1205_v1 = vld [vmem:[#allocation5 + $0x8] sm:$0xff]  ;;  %s740_s24 = smul.u32 24, %s984_s12  ;;  %s559_s12 = scalar_lea.sflag [#allocation4], %s1112_s30 }
  0x2c   : > { %741 = vmatpush.msk.msra.mxu2 %vm213_vm0, %v1000_v2  ;;  %751 = vmatpush.msk.msra.mxu3 %vm213_vm0, %v1000_v2  ;;  %v237_v19 = vperm.slane %v216_v3, 3  ;;  %v238_v20 = vperm.slane %v217_v4, 3  ;;  %v246_v21 = vmul.f32 %v243_v11, %v216_v3  ;;  %v247_v22 = vmul.f32 %v244_v12, %v217_v4  ;;  %v1221_v12 = vld [vmem:[#allocation5 + $0x20] sm:$0xff]  ;;  %s1298_s19 = scalar_lea.vmem [#allocation7], %s763_s17 }
  0x2d   : > { %682 = vmatpush.msk.msra.mxu0 %vm213_vm0, %v1000_v2  ;;  %688 = vmatpush.msk.msra.mxu1 %vm213_vm0, %v1000_v2  ;;  %v231_v23 = vperm.slane %v216_v3, 2  ;;  %v232_v24 = vperm.slane %v217_v4, 2  ;;  %v225_v27 = vperm.slane %v216_v3, 1  ;;  %v226_v28 = vperm.slane %v217_v4, 1  ;;  %s573_s16 = scalar_lea.hbm %s1371_s2, %s740_s24  ;;  %s574_s21 = sshll.u32 %s1298_s19, 4  ;;  %s575_s21 = int_to_ptr.vmem [resolvable:$true] %s574_s21 }
  0x2e   : > { %742 = vmatpush.msra.mxu2 %v216_v3  ;;  %752 = vmatpush.msra.mxu3 %v217_v4  ;;  %v240_v25 = vmul.f32 %v237_v19, %v216_v3  ;;  %v241_v26 = vmul.f32 %v238_v20, %v217_v4  ;;  %v219_v31 = vperm.slane %v216_v3, 0  ;;  %v220_v32 = vperm.slane %v217_v4, 0  ;;  %s576_s22 = sshll.u32 %s573_s16, 4  ;;  %s577_s22 = int_to_ptr.hbm [resolvable:$true] %s576_s22 }
  0x2f   : > { %290 = vmatpush.msra.mxu0 %v216_v3  ;;  %322 = vmatpush.msra.mxu1 %v217_v4  ;;  %v234_v29 = vmul.f32 %v231_v23, %v216_v3  ;;  %v235_v30 = vmul.f32 %v232_v24, %v217_v4  ;;  %v228_v33 = vmul.f32 %v225_v27, %v216_v3  ;;  %v263_v39 = vperm.slane %v1144_v37, 7  ;;  %s920_s23 = sshra.s32 %s577_s22, 4  ;;  %s921_s23 = int_to_ptr.hbm [resolvable:$true] %s920_s23 }
  0x30   : > { %743 = vmatpush.msra.mxu2 %v264_v13  ;;  %753 = vmatpush.msra.mxu3 %v265_v14  ;;  %v229_v34 = vmul.f32 %v226_v28, %v217_v4  ;;  %v222_v35 = vmul.f32 %v219_v31, %v216_v3  ;;  %v223_v36 = vmul.f32 %v220_v32, %v217_v4  ;;  %v440_v40 = vperm.slane %v1147_v38, 7  ;;  %s922_s18 = scalar_lea.hbm %s921_s23, 240  ;;  %p927_p8 = scmp.lt.s32.totalorder %s921_s23, %s1371_s2 }
  0x31   : > { %291 = vmatpush.msra.mxu0 %v264_v13  ;;  %323 = vmatpush.msra.mxu1 %v265_v14  ;;  %v257_v44 = vperm.slane %v1144_v37, 6  ;;  %v434_v45 = vperm.slane %v1147_v38, 6  ;;  %v441_v46 = vperm.slane %v1152_v41, 7  ;;  %v442_v47 = vperm.slane %v1155_v42, 7  ;;  %p923_p1 = scmp.ne.s32.totalorder %s921_s23, %s922_s18  ;;  %p928_p12 = scmp.lt.s32.totalorder %s926_s27, %s922_s18 }
  0x32   : > { %744 = vmatpush.msra.mxu2 %v258_v15  ;;  %754 = vmatpush.msra.mxu3 %v259_v16  ;;  %v266_v49 = vmul.f32 %v263_v39, %v1144_v37  ;;  %v443_v50 = vmul.f32 %v1147_v38, %v440_v40  ;;  %v251_v51 = vperm.slane %v1144_v37, 5  ;;  %v428_v52 = vperm.slane %v1147_v38, 5 }
  0x33   : > { %292 = vmatpush.msra.mxu0 %v258_v15  ;;  %324 = vmatpush.msra.mxu1 %v259_v16  ;;  %v260_v53 = vmul.f32 %v257_v44, %v1144_v37  ;;  %v437_v54 = vmul.f32 %v1147_v38, %v434_v45  ;;  %v435_v55 = vperm.slane %v1152_v41, 6  ;;  %v436_v56 = vperm.slane %v1155_v42, 6  ;;  %p924_p2 = pnand %p923_p1, %p1094_p5  ;;  %p929_p13 = por %p928_p12, %p927_p8 }
  0x34   : > { %745 = vmatpush.msra.mxu2 %v252_v17  ;;  %755 = vmatpush.msra.mxu3 %v253_v18  ;;  %v444_v57 = vmul.f32 %v1152_v41, %v441_v46  ;;  %v445_v58 = vmul.f32 %v1155_v42, %v442_v47  ;;  %v245_v59 = vperm.slane %v1144_v37, 4  ;;  %v422_v60 = vperm.slane %v1147_v38, 4 }
  0x35   : > { %293 = vmatpush.msra.mxu0 %v252_v17  ;;  %325 = vmatpush.msra.mxu1 %v253_v18  ;;  %v254_v61 = vmul.f32 %v251_v51, %v1144_v37  ;;  %v431_v62 = vmul.f32 %v1147_v38, %v428_v52  ;;  %v429_v63 = vperm.slane %v1152_v41, 5  ;;  %v430_v0 = vperm.slane %v1155_v42, 5  ;;  %p925_p4 = pneg %p924_p2 }
  0x36   : > { %746 = vmatpush.msra.mxu2 %v246_v21  ;;  %756 = vmatpush.msra.mxu3 %v247_v22  ;;  %v439_v3 = vmul.f32 %v1155_v42, %v436_v56  ;;  %v239_v4 = vperm.slane %v1144_v37, 3  ;;  %v416_v5 = vperm.slane %v1147_v38, 3  ;;  %v248_v6 = vmul.f32 %v245_v59, %v1144_v37 }
  0x37   : > { %294 = vmatpush.msra.mxu0 %v246_v21  ;;  %326 = vmatpush.msra.mxu1 %v247_v22  ;;  %v425_v7 = vmul.f32 %v1147_v38, %v422_v60  ;;  %v423_v8 = vperm.slane %v1152_v41, 4  ;;  %v424_v9 = vperm.slane %v1155_v42, 4  ;;  %v233_v10 = vperm.slane %v1144_v37, 2  ;;  %p930_p0 = pnand %p929_p13, %p925_p4 }
  0x38   : > { %747 = vmatpush.msra.mxu2 %v240_v25  ;;  %757 = vmatpush.msra.mxu3 %v241_v26  ;;  %v410_v11 = vperm.slane %v1147_v38, 2  ;;  %v432_v13 = vmul.f32 %v1152_v41, %v429_v63  ;;  %v433_v14 = vmul.f32 %v1155_v42, %v430_v0  ;;  %v417_v15 = vperm.slane %v1152_v41, 3 }
  0x39   : > { %295 = vmatpush.msra.mxu0 %v240_v25  ;;  %327 = vmatpush.msra.mxu1 %v241_v26  ;;  %v418_v16 = vperm.slane %v1155_v42, 3  ;;  %v242_v17 = vmul.f32 %v239_v4, %v1144_v37  ;;  %v419_v18 = vmul.f32 %v1147_v38, %v416_v5  ;;  %v227_v19 = vperm.slane %v1144_v37, 1 }
  0x3a   : > { %748 = vmatpush.msra.mxu2 %v234_v29  ;;  %758 = vmatpush.msra.mxu3 %v235_v30  ;;  %v404_v20 = vperm.slane %v1147_v38, 1  ;;  %v426_v21 = vmul.f32 %v1152_v41, %v423_v8  ;;  %v427_v22 = vmul.f32 %v1155_v42, %v424_v9  ;;  %v236_v23 = vmul.f32 %v233_v10, %v1144_v37 }
  0x3b   : > { %296 = vmatpush.msra.mxu0 %v234_v29  ;;  %328 = vmatpush.msra.mxu1 %v235_v30  ;;  %v413_v24 = vmul.f32 %v1147_v38, %v410_v11  ;;  %v221_v25 = vperm.slane %v1144_v37, 0  ;;  %v398_v26 = vperm.slane %v1147_v38, 0  ;;  %v420_v27 = vmul.f32 %v1152_v41, %v417_v15 }
  0x3c   : > { %749 = vmatpush.msra.mxu2 %v228_v33  ;;  %759 = vmatpush.msra.mxu3 %v229_v34  ;;  %v421_v28 = vmul.f32 %v1155_v42, %v418_v16  ;;  %v411_v29 = vperm.slane %v1152_v41, 2  ;;  %v412_v30 = vperm.slane %v1155_v42, 2  ;;  %v230_v31 = vmul.f32 %v227_v19, %v1144_v37 }
  0x3d   : > { %297 = vmatpush.msra.mxu0 %v228_v33  ;;  %329 = vmatpush.msra.mxu1 %v229_v34  ;;  %v407_v32 = vmul.f32 %v1147_v38, %v404_v20  ;;  %v405_v33 = vperm.slane %v1152_v41, 1  ;;  %v406_v34 = vperm.slane %v1155_v42, 1  ;;  %v401_v39 = vmul.f32 %v1147_v38, %v398_v26 }
  0x3e   : > { %750 = vmatpush.msra.mxu2 %v222_v35  ;;  %760 = vmatpush.msra.mxu3 %v223_v36  ;;  %v414_v40 = vmul.f32 %v1152_v41, %v411_v29  ;;  %v415_v44 = vmul.f32 %v1155_v42, %v412_v30  ;;  %v399_v45 = vperm.slane %v1152_v41, 0  ;;  %v400_v46 = vperm.slane %v1155_v42, 0 }
  0x3f   : > { %298 = vmatpush.msra.mxu0 %v222_v35  ;;  %330 = vmatpush.msra.mxu1 %v223_v36  ;;  %v208_v35 = vld [vmem:[#allocation5 + $0x10] sm:$0xff]  ;;  %v224_v36 = vmul.f32 %v221_v25, %v1144_v37 }
  0x40   : > { %694 = vmatpush.msk.msrb.mxu2 %vm213_vm0, %v1000_v2  ;;  %703 = vmatpush.msk.msrb.mxu3 %vm213_vm0, %v1000_v2  ;;  %v402_v47 = vmul.f32 %v1152_v41, %v399_v45 }
  0x41   : > { %683 = vmatmul.msk.f32.vlgmr.msra.gmra.mxu0 %vm267_vm1, %v1157_v43  ;;  %689 = vmatmul.msk.f32.vlgmr.msra.gmra.mxu1 %vm267_vm1, %v1157_v43 }
  0x42   : > { %709 = vmatpush.msk.msrb.mxu0 %vm213_vm0, %v1000_v2  ;;  %715 = vmatpush.msk.msrb.mxu1 %vm213_vm0, %v1000_v2  ;;  %v438_v2 = vmul.f32 %v1152_v41, %v435_v55 }
  0x43   : > { %354 = vmatpush.msrb.mxu2 %v1144_v37  ;;  %453 = vmatpush.msrb.mxu3 %v1147_v38  ;;  %v408_v37 = vmul.f32 %v1152_v41, %v405_v33  ;;  %v409_v38 = vmul.f32 %v1155_v42, %v406_v34 }
  0x44   : > { %686 = vmatmul.msk.f32.vlgmr.msra.gmra.mxu2 %vm267_vm1, %v1173_v48  ;;  %692 = vmatmul.msk.f32.vlgmr.msra.gmra.mxu3 %vm267_vm1, %v1173_v48 }
  0x45   : > { %355 = vmatpush.msrb.mxu2 %v266_v49  ;;  %454 = vmatpush.msrb.mxu3 %v443_v50  ;;  %v403_v49 = vmul.f32 %v1155_v42, %v400_v46 }
  0x46   : > { %485 = vmatpush.msrb.mxu0 %v1152_v41  ;;  %517 = vmatpush.msrb.mxu1 %v1155_v42 }
  0x47   : > { %356 = vmatpush.msrb.mxu2 %v260_v53  ;;  %455 = vmatpush.msrb.mxu3 %v437_v54 }
  0x48   : > { %486 = vmatpush.msrb.mxu0 %v444_v57  ;;  %518 = vmatpush.msrb.mxu1 %v445_v58 }
  0x49   : > { %357 = vmatpush.msrb.mxu2 %v254_v61  ;;  %456 = vmatpush.msrb.mxu3 %v431_v62 }
  0x4a   : > { %684 = vmatmul.msk.f32.gmra.mxu0 %vm267_vm1, %v1205_v1  ;;  %690 = vmatmul.msk.f32.gmra.mxu1 %vm267_vm1, %v1205_v1 }
  0x4b   : > { %487 = vmatpush.msrb.mxu0 %v438_v2  ;;  %519 = vmatpush.msrb.mxu1 %v439_v3 }
  0x4c   : > { %358 = vmatpush.msrb.mxu2 %v248_v6  ;;  %457 = vmatpush.msrb.mxu3 %v425_v7 }
  0x4d   : > { %687 = vmatmul.msk.f32.gmra.mxu2 %vm267_vm1, %v1221_v12  ;;  %693 = vmatmul.msk.f32.gmra.mxu3 %vm267_vm1, %v1221_v12 }
  0x4e   : > { %488 = vmatpush.msrb.mxu0 %v432_v13  ;;  %520 = vmatpush.msrb.mxu1 %v433_v14 }
  0x4f   : > { %359 = vmatpush.msrb.mxu2 %v242_v17  ;;  %458 = vmatpush.msrb.mxu3 %v419_v18 }
  0x50   : > { %489 = vmatpush.msrb.mxu0 %v426_v21  ;;  %521 = vmatpush.msrb.mxu1 %v427_v22 }
  0x51   : > { %360 = vmatpush.msrb.mxu2 %v236_v23  ;;  %459 = vmatpush.msrb.mxu3 %v413_v24 }
  0x52   : > { %490 = vmatpush.msrb.mxu0 %v420_v27  ;;  %522 = vmatpush.msrb.mxu1 %v421_v28 }
  0x53   : > { %361 = vmatpush.msrb.mxu2 %v230_v31  ;;  %460 = vmatpush.msrb.mxu3 %v407_v32 }
  0x54   : > { %685 = vmatmul.msk.f32.gmra.mxu0 %vm267_vm1, %v208_v35  ;;  %691 = vmatmul.msk.f32.gmra.mxu1 %vm267_vm1, %v208_v35 }
  0x55   : > { %362 = vmatpush.msrb.mxu2 %v224_v36  ;;  %461 = vmatpush.msrb.mxu3 %v401_v39 }
  0x56   : > { %491 = vmatpush.msrb.mxu0 %v414_v40  ;;  %523 = vmatpush.msrb.mxu1 %v415_v44 }
  0x57   : > { %695 = vmatmul.msk.f32.vlgmr.msrb.gmra.mxu2 %vm267_vm1, %v1157_v43  ;;  %704 = vmatmul.msk.f32.vlgmr.msrb.gmra.mxu3 %vm267_vm1, %v1157_v43 }
  0x58   : > { %492 = vmatpush.msrb.mxu0 %v408_v37  ;;  %524 = vmatpush.msrb.mxu1 %v409_v38 }
  0x5a   : > { %493 = vmatpush.msrb.mxu0 %v402_v47  ;;  %525 = vmatpush.msrb.mxu1 %v403_v49 }
  0x5c   : > { %710 = vmatmul.msk.f32.vlgmr.msrb.gmra.mxu0 %vm267_vm1, %v1157_v43  ;;  %716 = vmatmul.msk.f32.vlgmr.msrb.gmra.mxu1 %vm267_vm1, %v1157_v43 }
  0x5f   : > { %696 = vmatmul.msk.f32.gmra.mxu2 %vm267_vm1, %v1205_v1  ;;  %705 = vmatmul.msk.f32.gmra.mxu3 %vm267_vm1, %v1205_v1 }
  0x64   : > { %711 = vmatmul.msk.f32.gmra.mxu0 %vm267_vm1, %v1205_v1  ;;  %717 = vmatmul.msk.f32.gmra.mxu1 %vm267_vm1, %v1205_v1 }
  0x67   : > { %697 = vmatmul.msk.f32.gmra.mxu2 %vm267_vm1, %v208_v35  ;;  %706 = vmatmul.msk.f32.gmra.mxu3 %vm267_vm1, %v208_v35 }
  0x6c   : > { %712 = vmatmul.msk.f32.gmra.mxu0 %vm267_vm1, %v208_v35  ;;  %718 = vmatmul.msk.f32.gmra.mxu1 %vm267_vm1, %v208_v35 }
  0x6f   : > { %698 = vmatmul.msk.f32.gmra.mxu2 %vm267_vm1, %v1173_v48  ;;  %707 = vmatmul.msk.f32.gmra.mxu3 %vm267_vm1, %v1173_v48 }
  0x74   : > { %713 = vmatmul.msk.f32.gmra.mxu0 %vm267_vm1, %v1173_v48  ;;  %719 = vmatmul.msk.f32.gmra.mxu1 %vm267_vm1, %v1173_v48 }
  0x77   : > { %699 = vmatmul.msk.f32.gmra.mxu2 %vm267_vm1, %v1221_v12  ;;  %708 = vmatmul.msk.f32.gmra.mxu3 %vm267_vm1, %v1221_v12 }
  0x7c   : > { %714 = vmatmul.msk.f32.gmra.mxu0 %vm267_vm1, %v1221_v12  ;;  %720 = vmatmul.msk.f32.gmra.mxu1 %vm267_vm1, %v1221_v12 }
  0xbe   : > { %v300_v41 = vpop.f32.mrf.mxu0  ;;  %v332_v42 = vpop.f32.mrf.mxu1 }
  0xbf   : > { %379 = vst [vmem:[%s1298_s19] sm:$0xff] %v300_v41 }
  0xc0   : > { %380 = vst [vmem:[%s1298_s19 + $0x8] sm:$0xff] %v332_v42 }
  0xc7   : > { %v303_v43 = vpop.f32.mrf.mxu0  ;;  %v309_v48 = vpop.f32.mrf.mxu2 }
  0xc8   : > { %382 = vst [vmem:[%s1298_s19 + $0x18] sm:$0xff] %v303_v43  ;;  %v335_v50 = vpop.f32.mrf.mxu1  ;;  %v341_v51 = vpop.f32.mrf.mxu3 }
  0xc9   : > { %388 = vst [vmem:[%s1298_s19 + $0x48] sm:$0xff] %v309_v48 }
  0xca   : > { %383 = vst [vmem:[%s1298_s19 + $0x20] sm:$0xff] %v335_v50 }
  0xcb   : > { %389 = vst [vmem:[%s1298_s19 + $0x50] sm:$0xff] %v341_v51 }
  0xd0   : > { %v312_v52 = vpop.f32.mrf.mxu2  ;;  %v344_v53 = vpop.f32.mrf.mxu3 }
  0xd1   : > { %v306_v54 = vpop.f32.mrf.mxu0  ;;  %391 = vst [vmem:[%s1298_s19 + $0x60] sm:$0xff] %v312_v52  ;;  %v338_v55 = vpop.f32.mrf.mxu1 }
  0xd2   : > { %385 = vst [vmem:[%s1298_s19 + $0x30] sm:$0xff] %v306_v54 }
  0xd3   : > { %386 = vst [vmem:[%s1298_s19 + $0x38] sm:$0xff] %v338_v55 }
  0xd4   : > { %392 = vst [vmem:[%s1298_s19 + $0x68] sm:$0xff] %v344_v53 }
  0xd9   : > { %v495_v56 = vpop.f32.mrf.mxu0  ;;  %v527_v57 = vpop.f32.mrf.mxu1 }
  0xda   : > { %v364_v58 = vpop.f32.mrf.mxu2  ;;  %v463_v59 = vpop.f32.mrf.mxu3  ;;  %722 = vst [vmem:[%s1298_s19 + $0x80] sm:$0xff] %v495_v56 }
  0xdb   : > { %381 = vst [vmem:[%s1298_s19 + $0x10] sm:$0xff] %v364_v58 }
  0xdc   : > { %721 = vst [vmem:[%s1298_s19 + $0x78] sm:$0xff] %v463_v59 }
  0xdd   : > { %723 = vst [vmem:[%s1298_s19 + $0x88] sm:$0xff] %v527_v57 }
  0xe1   : > { %v498_v60 = vpop.f32.mrf.mxu0  ;;  %v530_v61 = vpop.f32.mrf.mxu1 }
  0xe2   : > { %v367_v62 = vpop.f32.mrf.mxu2  ;;  %v466_v63 = vpop.f32.mrf.mxu3  ;;  %725 = vst [vmem:[%s1298_s19 + $0x98] sm:$0xff] %v498_v60 }
  0xe3   : > { %384 = vst [vmem:[%s1298_s19 + $0x28] sm:$0xff] %v367_v62 }
  0xe4   : > { %724 = vst [vmem:[%s1298_s19 + $0x90] sm:$0xff] %v466_v63 }
  0xe5   : > { %726 = vst [vmem:[%s1298_s19 + $0xa0] sm:$0xff] %v530_v61 }
  0xe9   : > { %v501_v0 = vpop.f32.mrf.mxu0  ;;  %v533_v1 = vpop.f32.mrf.mxu1 }
  0xea   : > { %v370_v2 = vpop.f32.mrf.mxu2  ;;  %v469_v3 = vpop.f32.mrf.mxu3  ;;  %728 = vst [vmem:[%s1298_s19 + $0xb0] sm:$0xff] %v501_v0 }
  0xeb   : > { %387 = vst [vmem:[%s1298_s19 + $0x40] sm:$0xff] %v370_v2 }
  0xec   : > { %727 = vst [vmem:[%s1298_s19 + $0xa8] sm:$0xff] %v469_v3 }
  0xed   : > { %729 = vst [vmem:[%s1298_s19 + $0xb8] sm:$0xff] %v533_v1 }
  0xf1   : > { %v504_v4 = vpop.f32.mrf.mxu0  ;;  %v536_v5 = vpop.f32.mrf.mxu1 }
  0xf2   : > { %v373_v6 = vpop.f32.mrf.mxu2  ;;  %v472_v7 = vpop.f32.mrf.mxu3  ;;  %731 = vst [vmem:[%s1298_s19 + $0xc8] sm:$0xff] %v504_v4 }
  0xf3   : > { %390 = vst [vmem:[%s1298_s19 + $0x58] sm:$0xff] %v373_v6 }
  0xf4   : > { %730 = vst [vmem:[%s1298_s19 + $0xc0] sm:$0xff] %v472_v7 }
  0xf5   : > { %732 = vst [vmem:[%s1298_s19 + $0xd0] sm:$0xff] %v536_v5 }
  0xf9   : > { %v507_v8 = vpop.f32.mrf.mxu0  ;;  %v539_v9 = vpop.f32.mrf.mxu1 }
  0xfa   : > { %v376_v10 = vpop.f32.mrf.mxu2  ;;  %v475_v11 = vpop.f32.mrf.mxu3  ;;  %734 = vst [vmem:[%s1298_s19 + $0xe0] sm:$0xff] %v507_v8 }
  0xfb   : > { %393 = vst [vmem:[%s1298_s19 + $0x70] sm:$0xff] %v376_v10 }
  0xfc   : > { %733 = vst [vmem:[%s1298_s19 + $0xd8] sm:$0xff] %v475_v11 }
  0xfd   : > { %735 = vst [vmem:[%s1298_s19 + $0xe8] sm:$0xff] %v539_v9 }
  0xfe   : > { %933 = shalt.err (!%p930_p0)
}
  0xff   : > { %s1001_s30 = smov 384   ;;  %s1002_s6 = smov 768  }
 0x100   : > { %s1003_s8 = smov 24  }
 0x101   : > { %770 = dma.vmem_to_hbm [thread:$0]  (%p1094_p5), %s575_s21, 3840, %s577_s22, %s559_s12, %s1001_s30, %s1002_s6, %s1003_s8  }
 0x102 PF: > { %s591_s17 = sand.u32 1, %s972_s9   ;;  %p781_p3 = pnand %p677_p11, %p1068_p6 }
 0x103   : > { %s592_s19 = scalar_lea.sflag [#allocation4], %s591_s17 }
 0x104   : > { %p782_p7 = pneg %p781_p3 }
 0x106   : > { %967 = dma.done.wait (%p782_p7), %s592_s19, 3840  }
 0x107   : > { %969 = vsyncadd (%p782_p7), %s592_s19, 4294963456  ;;  %s19_s14 = sadd.s32 1, %s992_s14   ;;  %s1378_s9 = smov %s976_s10 }
 0x108   : > { %p16_p9 = scmp.ge.s32.totalorder %s19_s14, 4   ;;  %s1379_s10 = smov %s980_s11 }
 0x109   : > { %s1380_s11 = smov %s1103_s7  ;;  %s1381_s12 = smov %s988_s13 }
 0x10a   : > { %s1382_s13 = smov %s1384_s29  ;;  %18 = sbr.rel (!%p16_p9) target bundleno = 7 (0x7), region = 80 }
 0x10f   :  { %598 = vsyncpa [#allocation3], 1 }
 0x110   :  { %600 = vsyncpa [#allocation3 + $0x1], 1 }
 0x111   :  { %601 = vsyncpa [#allocation6], 1 }
 0x112   :  { %602 = vsyncpa [#allocation4], 1 }
 0x113   :  { %604 = vsyncpa [#allocation4 + $0x1], 1 }

</bundles_post_ra>
